<compile_context>
chip_gen: v6e
topology: v6e:2x2x1
jax: 0.10.0
libtpu: 0.0.40
codegen_flags: <defaults>
</compile_context>

<pallas_src>
import functools

import numpy as np
import jax
import jax.numpy as jnp
from jax.experimental import pallas as pl
from jax.experimental.pallas import tpu as pltpu


# ----------------------------------------------------------------------------
# small helpers
# ----------------------------------------------------------------------------

def _cdiv(a, b):
    return -(-a // b)


def _round_up(a, m):
    return ((a + m - 1) // m) * m


def _vmem_capacity_bytes():
    """Physical VMEM of the local TPU generation (fallback: assume the
    smallest current part, v7x's 64 MiB per TensorCore)."""
    try:
        info = pltpu.get_tpu_info()
        cap = int(getattr(info, "vmem_capacity_bytes", 0) or 0)
        if cap > 0:
            return cap
    except Exception:
        pass
    return 64 * 1024 * 1024


# ----------------------------------------------------------------------------
# kernels
# ----------------------------------------------------------------------------

def _proj_kernel(x_ref, w_ref, b_ref, o_ref, acc_ref, *, mxu_dtype):
    """One (row-tile, K-tile) step of  out = x @ w + bias.

    Grid = (M//tm, K//tk); K is the reduction ("arbitrary") axis with an f32
    VMEM accumulator.  x is cast to the MXU dtype *inside* the kernel so its
    HBM DMA stays in the stored dtype (no extra wrapper-side conversion pass).
    """
    k = pl.program_id(1)

    @pl.when(k == 0)
    def _():
        acc_ref[...] = jnp.zeros_like(acc_ref)

    a = x_ref[...]
    if a.dtype != mxu_dtype:
        a = a.astype(mxu_dtype)
    acc_ref[...] += jnp.dot(a, w_ref[...], preferred_element_type=jnp.float32)

    @pl.when(k == pl.num_programs(1) - 1)
    def _():
        o_ref[...] = (acc_ref[...] + b_ref[...]).astype(o_ref.dtype)


def _fused_kernel(x_ref, w_ref, b_ref, o_ref, *, mxu_dtype, in_chans, patch, gw, rows):
    """Per-patch projection + unpatchify, writing the NCHW slab directly.

    One grid step covers `rows` patch-rows (rows*gw patches) of one image.
    The matmul result (rows*gw, C*p*p) is relaid out in VMEM to
    (C, rows, p, W) so the HBM write is exactly the contiguous NCHW slab
    out[b, :, gh0*p:(gh0+rows)*p, :] -- no post-kernel transpose and the last
    (lane) dimension of every store is the full image width W.
    """
    a = x_ref[...]
    if a.dtype != mxu_dtype:
        a = a.astype(mxu_dtype)
    acc = jnp.dot(a, w_ref[...], preferred_element_type=jnp.float32)  # (rows*gw, C*p*p)
    acc = acc + b_ref[...]
    y = acc.reshape(rows, gw, in_chans, patch, patch)   # (r, g, c, ph, pw)
    y = jnp.transpose(y, (2, 0, 3, 1, 4))               # (c, r, ph, g, pw)
    y = y.reshape(in_chans, rows, patch, gw * patch)    # (C, r, p, W)
    o_ref[0] = y.astype(o_ref.dtype)


# ----------------------------------------------------------------------------
# tile selection
# ----------------------------------------------------------------------------

def _pick_fused_rows(B, gs, K, N, x_bytes, w_bytes, o_bytes, budget):
    """Patch-rows per grid step for the fused kernel.

    tr must divide gs (a step never straddles an image) and tr*gs must be a
    multiple of 8 (sublane-aligned x block).  Prefers the largest tr that fits
    the VMEM budget, dropping lower only to get a grid of >= 2 steps so both
    v7x TensorCores get work."""
    def need(tr):
        tp = tr * gs
        return (2 * tp * K * x_bytes        # x tiles (double buffered)
                + 2 * tp * N * o_bytes      # NCHW output slabs (double buffered)
                + 2 * K * N * w_bytes       # resident weight (Pallas keeps 2 buffers)
                + 3 * tp * N * 4            # f32 matmul result + relayout temporaries
                + 2 * N * 4 + (2 << 20))    # bias + Mosaic slack

    best = None
    for tr in range(gs, 0, -1):
        if gs % tr or (tr * gs) % 8:
            continue
        if need(tr) > budget:
            continue
        if best is None:
            best = tr
        if B * (gs // tr) >= 2:
            return tr, need(tr)
    return (best, need(best)) if best is not None else (None, 0)


def _pick_matmul_tiles(M, K, n_store, x_bytes, w_bytes, o_bytes, budget):
    """(row tile, K tile) for the unfused matmul.

    Keeps the whole K resident when it fits (k grid length 1, weight DMA'd
    once); otherwise halves the K tile (>= 128, sublane aligned) so large
    embed_dim/patch configs still fit v7x's 64 MiB VMEM.  The row tile is the
    largest multiple of 8 (capped at 2048) that fits, preferring exact
    divisors of M and grid lengths >= 4 (>= 2)."""
    def need(tm, tk):
        return (2 * tm * tk * x_bytes         # x tiles (double buffered)
                + 2 * tm * n_store * o_bytes  # output tiles (double buffered)
                + 2 * tk * n_store * w_bytes  # weight blocks (double buffered even
                                              #   when grid-invariant)
                + tm * n_store * 4            # f32 accumulator scratch
                + 2 * n_store * 4 + (2 << 20))

    tk = K
    while (need(8, tk) > budget and tk % 2 == 0 and tk // 2 >= 128
           and (tk // 2) % 8 == 0):
        tk //= 2

    cap_tm = max(8, min(_round_up(M, 8), 2048))
    cands = [t for t in range(8, cap_tm + 1, 8) if need(t, tk) <= budget]
    if not cands:
        return 8, tk, need(8, tk)

    grid = lambda t: _cdiv(M, t)
    for pred in (lambda t: M % t == 0 and grid(t) >= 4,
                 lambda t: M % t == 0 and grid(t) >= 2,
                 lambda t: M % t == 0,
                 lambda t: grid(t) >= 4,
                 lambda t: True):
        sel = [t for t in cands if pred(t)]
        if sel:
            tm = max(sel)
            return tm, tk, need(tm, tk)


# ----------------------------------------------------------------------------
# public wrapper
# ----------------------------------------------------------------------------

def patch_unembedding(x, weight, bias, *, img_size, patch_size, in_chans,
                      embed_dim, compute_dtype=jnp.bfloat16, out_dtype=None,
                      fuse_unpatchify="auto"):
    """Forward pass of PatchUnembedding.

    x:      (B, num_patches, embed_dim)
    weight: (embed_dim, in_chans, patch_size, patch_size)  (ConvTranspose2d layout)
    bias:   (in_chans,)
    returns NCHW (B, in_chans, img_size, img_size)

    compute_dtype: dtype fed to the MXU.  The cast happens *inside* the
      kernel, so x's HBM DMA stays in its stored dtype; bf16 is MXU-native on
      v5e/v6e/v7x and recommended for inference on all of them.  Pass None for
      a bit-exact path in x.dtype.  Accumulation / bias add are always f32.
    out_dtype: output dtype (default x.dtype); bf16 halves output HBM bytes.
    fuse_unpatchify: "auto" (default) tries the fused NCHW-writing kernel and
      falls back to matmul + XLA unpatchify if Mosaic rejects the in-kernel
      relayout; True forces the fused path; False disables it.
    """
    B, num_patches, E = x.shape
    gs = img_size // patch_size
    p, C, K = patch_size, in_chans, embed_dim
    assert num_patches == gs * gs and E == embed_dim and gs * p == img_size

    out_dt = np.dtype(x.dtype if out_dtype is None else out_dtype)
    mxu_dt = np.dtype(x.dtype if compute_dtype is None else compute_dtype)

    M = B * num_patches
    N = C * p * p
    W = gs * p

    x_flat = x.reshape(M, K)                            # free; NO dtype cast here
    w_flat = weight.reshape(K, N).astype(mxu_dt)        # tiny one-off parameter cast
    b_flat = jnp.repeat(bias.astype(jnp.float32), p * p).reshape(1, N)

    x_bytes = np.dtype(x.dtype).itemsize
    w_bytes = mxu_dt.itemsize
    o_bytes = out_dt.itemsize

    cap = _vmem_capacity_bytes()
    budget = (cap * 3) // 4
    flops = 2 * M * K * N

    # ------------------ fused path (matmul + unpatchify in one kernel) -------
    if fuse_unpatchify in ("auto", True):
        tr, need = _pick_fused_rows(B, gs, K, N, x_bytes, w_bytes, o_bytes, budget)
        if tr is None:
            if fuse_unpatchify is True:
                raise ValueError("fused path needs the resident weight to fit VMEM; "
                                 "use fuse_unpatchify='auto' or False.")
        else:
            tp = tr * gs
            n_t = gs // tr
            limit = int(min(cap * 15 // 16, max(budget, need + (2 << 20))))
            kern = functools.partial(_fused_kernel, mxu_dtype=mxu_dt, in_chans=C,
                                     patch=p, gw=gs, rows=tr)
            cost = pl.CostEstimate(
                flops=flops, transcendentals=0,
                bytes_accessed=(M * K * x_bytes + K * N * w_bytes + N * 4
                                + B * C * img_size * img_size * o_bytes))
            try:
                out5 = pl.pallas_call(
                    kern,
                    out_shape=jax.ShapeDtypeStruct((B, C, gs, p, W), out_dt),
                    grid=(B * n_t,),
                    in_specs=[
                        pl.BlockSpec((tp, K), lambda i: (i, 0)),   # streamed x rows
                        pl.BlockSpec((K, N), lambda i: (0, 0)),    # resident weight
                        pl.BlockSpec((1, N), lambda i: (0, 0)),    # resident bias
                    ],
                    out_specs=pl.BlockSpec(
                        (1, C, tr, p, W),
                        lambda i: (i // n_t, 0, i % n_t, 0, 0)),
                    compiler_params=pltpu.CompilerParams(
                        dimension_semantics=("parallel",),
                        vmem_limit_bytes=limit),
                    cost_estimate=cost,
                )(x_flat, w_flat, b_flat)
                # (B, C, gh, p, W) is row-major identical to NCHW -> free reshape.
                return out5.reshape(B, C, img_size, img_size)
            except Exception:
                if fuse_unpatchify is True:
                    raise
                # Mosaic could not lower the in-kernel relayout for this
                # geometry; fall through to the unfused path below.
                pass

    # ------------------ unfused path: tiled matmul + XLA unpatchify ----------
    # Pad the projection width to >= 128 lanes so output stores are never
    # narrow masked stores; the zero columns are sliced off afterwards (the
    # slice fuses into the downstream transpose).
    n_store = N if N >= 128 else 128
    wp, bp = w_flat, b_flat
    if n_store != N:
        wp = jnp.pad(w_flat, ((0, 0), (0, n_store - N)))
        bp = jnp.pad(b_flat, ((0, 0), (0, n_store - N)))

    tm, tk, need = _pick_matmul_tiles(M, K, n_store, x_bytes, w_bytes, o_bytes, budget)
    m_blocks = _cdiv(M, tm)
    k_blocks = K // tk
    limit = int(min(cap * 15 // 16, max(budget, need + (2 << 20))))

    kern = functools.partial(_proj_kernel, mxu_dtype=mxu_dt)
    cost = pl.CostEstimate(
        flops=flops, transcendentals=0,
        bytes_accessed=(M * K * x_bytes + K * n_store * w_bytes + n_store * 4
                        + M * n_store * o_bytes))

    out_flat = pl.pallas_call(
        kern,
        out_shape=jax.ShapeDtypeStruct((M, n_store), out_dt),
        grid=(m_blocks, k_blocks),
        in_specs=[
            pl.BlockSpec((tm, tk), lambda i, k: (i, k)),       # streamed x tiles
            pl.BlockSpec((tk, n_store), lambda i, k: (k, 0)),  # weight (resident if k_blocks==1)
            pl.BlockSpec((1, n_store), lambda i, k: (0, 0)),   # resident bias
        ],
        out_specs=pl.BlockSpec((tm, n_store), lambda i, k: (i, 0)),
        scratch_shapes=[pltpu.VMEM((tm, n_store), jnp.float32)],
        compiler_params=pltpu.CompilerParams(
            dimension_semantics=("parallel", "arbitrary"),
            vmem_limit_bytes=limit),
        cost_estimate=cost,
    )(x_flat, wp, bp)

    if n_store != N:
        out_flat = out_flat[:, :N]

    # TODO(synk): this XLA unpatchify re-reads/re-writes the whole output (one
    # extra HBM round trip); it only runs when the fused kernel above cannot
    # be lowered for the given (patch_size, in_chans) geometry.
    out = out_flat.reshape(B, gs, gs, C, p, p)
    out = out.transpose(0, 3, 1, 4, 2, 5)                 # (B, C, gh, ph, gw, pw)
    return out.reshape(B, C, img_size, img_size)


# ----------------------------------------------------------------------------
# self-test
# ----------------------------------------------------------------------------

if __name__ == "__main__":
    img_size, patch_size, in_chans, embed_dim = 16, 4, 4, 32
    gs = img_size // patch_size
    num_patches = gs * gs
    B = 2

    key = jax.random.PRNGKey(0)
    kx, kw, kb = jax.random.split(key, 3)

    x = jax.random.normal(kx, (B, num_patches, embed_dim), dtype=jnp.float32)
    weight = jax.random.normal(kw, (embed_dim, in_chans, patch_size, patch_size),
                               dtype=jnp.float32) * 0.02
    bias = jax.random.normal(kb, (in_chans,), dtype=jnp.float32) * 0.02

    # pure-JAX reference of the module semantics (per-patch linear projection)
    xg = x.transpose(0, 2, 1).reshape(B, embed_dim, gs, gs)
    ref = jnp.einsum("begh,ecpq->bcgphq", xg, weight).reshape(
        B, in_chans, img_size, img_size) + bias[None, :, None, None]

    # exact-precision path (matmul in the stored dtype)
    out_f32 = patch_unembedding(x, weight, bias, img_size=img_size,
                                patch_size=patch_size, in_chans=in_chans,
                                embed_dim=embed_dim, compute_dtype=None)
    out_f32 = jax.block_until_ready(out_f32)
    assert out_f32.shape == (B, in_chans, img_size, img_size)
    assert jnp.allclose(out_f32, ref, atol=5e-3, rtol=5e-3)

    # bf16-fed MXU path (x cast inside the kernel; f32 accumulation)
    out_bf16 = patch_unembedding(x, weight, bias, img_size=img_size,
                                 patch_size=patch_size, in_chans=in_chans,
                                 embed_dim=embed_dim,
                                 compute_dtype=jnp.bfloat16)
    out_bf16 = jax.block_until_ready(out_bf16)
    assert out_bf16.shape == (B, in_chans, img_size, img_size)
    assert jnp.allclose(out_bf16, ref, atol=2e-2, rtol=2e-2)

    # bf16 output (halves output HBM traffic for downstreams that accept it)
    out_lo = patch_unembedding(x, weight, bias, img_size=img_size,
                               patch_size=patch_size, in_chans=in_chans,
                               embed_dim=embed_dim,
                               compute_dtype=jnp.bfloat16,
                               out_dtype=jnp.bfloat16)
    out_lo = jax.block_until_ready(out_lo)
    assert out_lo.dtype == jnp.bfloat16
    assert jnp.allclose(out_lo.astype(jnp.float32), ref, atol=3e-2, rtol=3e-2)

    print("KERNEL_OK")
</pallas_src>

<mosaic_0001>
module attributes {stable_mosaic.version = 11 : i64} {
  func.func @_proj_kernel(%arg0: i32, %arg1: i32, %arg2: memref<8x32xf32, #tpu.memory_space<vmem>>, %arg3: memref<32x128xf32, #tpu.memory_space<vmem>>, %arg4: memref<1x128xf32, #tpu.memory_space<vmem>>, %arg5: memref<8x128xf32, #tpu.memory_space<vmem>>, %arg6: memref<8x128xf32, #tpu.memory_space<vmem>>) attributes {dimension_semantics = [#tpu.dimension_semantics<parallel>, #tpu.dimension_semantics<arbitrary>], iteration_bounds = array<i64: 4, 1>, scalar_prefetch = 0 : i64, scratch_operands = 1 : i64, tpu.core_type = #tpu.core_type<tc>, window_params = [{transform_indices = @transform_0, window_bounds = array<i64: 8, 32>}, {transform_indices = @transform_1, window_bounds = array<i64: 32, 128>}, {pipeline_mode = #tpu.pipeline_mode<synchronous>, transform_indices = @transform_2, window_bounds = array<i64: 1, 128>}, {transform_indices = @transform_3, window_bounds = array<i64: 8, 128>}]} {
    %c0_i32 = arith.constant 0 : i32
    %0 = arith.cmpi eq, %arg1, %c0_i32 : i32
    %1 = arith.extui %0 : i1 to i32
    %c0_i32_0 = arith.constant 0 : i32
    %2 = arith.cmpi ne, %1, %c0_i32_0 : i32
    scf.if %2 {
      %cst_10 = arith.constant 0.000000e+00 : f32
      %12 = vector.broadcast %cst_10 : f32 to vector<8x128xf32>
      %c0_11 = arith.constant 0 : index
      %c0_12 = arith.constant 0 : index
      %13 = vector.load %arg6[%c0_11, %c0_12] : memref<8x128xf32, #tpu.memory_space<vmem>>, vector<8x128xf32>
      tpu.vector_store %arg6[%c0_11, %c0_12], %12 {strides = array<i32>} : memref<8x128xf32, #tpu.memory_space<vmem>>, vector<8x128xf32>,
    } else {
    }
    %c0 = arith.constant 0 : index
    %c0_1 = arith.constant 0 : index
    %3 = vector.load %arg2[%c0, %c0_1] : memref<8x32xf32, #tpu.memory_space<vmem>>, vector<8x32xf32>
    %c0_2 = arith.constant 0 : index
    %c0_3 = arith.constant 0 : index
    %4 = vector.load %arg6[%c0_2, %c0_3] : memref<8x128xf32, #tpu.memory_space<vmem>>, vector<8x128xf32>
    %c0_4 = arith.constant 0 : index
    %c0_5 = arith.constant 0 : index
    %5 = vector.load %arg3[%c0_4, %c0_5] : memref<32x128xf32, #tpu.memory_space<vmem>>, vector<32x128xf32>
    %cst = arith.constant dense<0.000000e+00> : vector<8x128xf32>
    %6 = tpu.matmul %3, %5, %cst {dimension_numbers = #tpu.dot_dimension_numbers<[1], [0], [0], [1], [0, 0, 1, 1], [], []>} : vector<8x32xf32>, vector<32x128xf32>, vector<8x128xf32> -> vector<8x128xf32>
    %7 = arith.addf %4, %6 : vector<8x128xf32>
    %c0_6 = arith.constant 0 : index
    %c0_7 = arith.constant 0 : index
    %8 = vector.load %arg6[%c0_6, %c0_7] : memref<8x128xf32, #tpu.memory_space<vmem>>, vector<8x128xf32>
    tpu.vector_store %arg6[%c0_6, %c0_7], %7 {strides = array<i32>} : memref<8x128xf32, #tpu.memory_space<vmem>>, vector<8x128xf32>,
    %c0_i32_8 = arith.constant 0 : i32
    %9 = arith.cmpi eq, %arg1, %c0_i32_8 : i32
    %10 = arith.extui %9 : i1 to i32
    %c0_i32_9 = arith.constant 0 : i32
    %11 = arith.cmpi ne, %10, %c0_i32_9 : i32
    scf.if %11 {
      %c0_10 = arith.constant 0 : index
      %c0_11 = arith.constant 0 : index
      %12 = vector.load %arg6[%c0_10, %c0_11] : memref<8x128xf32, #tpu.memory_space<vmem>>, vector<8x128xf32>
      %c0_12 = arith.constant 0 : index
      %c0_13 = arith.constant 0 : index
      %13 = vector.load %arg4[%c0_12, %c0_13] : memref<1x128xf32, #tpu.memory_space<vmem>>, vector<1x128xf32>
      %14 = vector.broadcast %13 : vector<1x128xf32> to vector<8x128xf32>
      %15 = arith.addf %12, %14 : vector<8x128xf32>
      %c0_14 = arith.constant 0 : index
      %c0_15 = arith.constant 0 : index
      %16 = vector.load %arg5[%c0_14, %c0_15] : memref<8x128xf32, #tpu.memory_space<vmem>>, vector<8x128xf32>
      tpu.vector_store %arg5[%c0_14, %c0_15], %15 {strides = array<i32>} : memref<8x128xf32, #tpu.memory_space<vmem>>, vector<8x128xf32>,
    } else {
    }
    return
  }
  func.func @transform_0(%arg0: i32, %arg1: i32) -> (i32, i32) {
    %c0_i32 = arith.constant 0 : i32
    return %arg0, %arg1 : i32, i32
  }
  func.func @transform_1(%arg0: i32, %arg1: i32) -> (i32, i32) {
    %c0_i32 = arith.constant 0 : i32
    %c0_i32_0 = arith.constant 0 : i32
    return %arg1, %c0_i32 : i32, i32
  }
  func.func @transform_2(%arg0: i32, %arg1: i32) -> (i32, i32) {
    %c0_i32 = arith.constant 0 : i32
    %c0_i32_0 = arith.constant 0 : i32
    %c0_i32_1 = arith.constant 0 : i32
    return %c0_i32, %c0_i32_0 : i32, i32
  }
  func.func @transform_3(%arg0: i32, %arg1: i32) -> (i32, i32) {
    %c0_i32 = arith.constant 0 : i32
    %c0_i32_0 = arith.constant 0 : i32
    return %arg0, %c0_i32 : i32, i32
  }
}

</mosaic_0001>

<bundles_post_ra>
// kernel: tpu_custom_call.1
= control target key start
LH: loop header
LB: loop body
LE: loop exit
PB: predicated region body
PF: predicated region fallthrough
CT: control target
= control target key end

     0   :  { %8 = vsyncpa [#allocation4], 0  ;;  %s881_s0 = inlined_call_operand.hbm [shape: f32[32,32], index: 0, kind: input, shape index: {}]   ;;  %s882_s1 = inlined_call_operand.hbm [shape: f32[32,128], index: 1, kind: input, shape index: {}]   ;;  %s883_s2 = inlined_call_operand.vmem [shape: f32[1,128], index: 2, kind: input, shape index: {}]   ;;  %s884_s3 = inlined_call_operand.hbm [shape: f32[32,128], index: 3, kind: output, shape index: {}]  }
   0x1   :  { %10 = vsyncpa [#allocation4 + $0x1], 0 }
   0x2   :  { %11 = vsyncpa [#allocation7], 0 }
   0x3   :  { %12 = vsyncpa [#allocation5], 0 }
   0x4   :  { %14 = vsyncpa [#allocation5 + $0x1], 0  ;;  %s707_s12 = smov 0   ;;  %s709_s13 = smov 0  }
   0x5   :  { %s711_s14 = smov 0   ;;  %s713_s15 = smov 0  }
   0x6   :  { %s715_s16 = smov 0   ;;  %s717_s17 = smov 0  }
   0x7 LB: > { %s430_s18 = sadd.s32 4294967295, %s678_s17   ;;  %s431_s19 = sadd.s32 4294967294, %s678_s17   ;;  %s678_s17 = sphi %s717_s17, %s20_s17   ;;  %s674_s16 = sphi %s715_s16, %s901_s16   ;;  %s670_s15 = sphi %s713_s15, %s900_s15   ;;  %s666_s14 = sphi %s711_s14, %s899_s14   ;;  %s662_s13 = sphi %s709_s13, %s898_s13   ;;  %s658_s12 = sphi %s707_s12, %s897_s12  }
   0x8   : > { %p54_p0 = scmp.ne.s32.totalorder %s662_s13, %s658_s12  ;;  %p741_p1 = scmp.eq.s32.totalorder %s430_s18, 0 }
   0x9   : > { %p745_p2 = scmp.eq.s32.totalorder %s430_s18, 3  ;;  %p131_p3 = scmp.eq.s32.totalorder %s431_s19, 3 }
   0xa   : > { %p751_p4 = por %p741_p1, %p54_p0  ;;  %p432_p5 = scmp.ge.s32.totalorder %s678_s17, 1 }
   0xb   : > { %p756_p6 = por %p131_p3, %p54_p0  ;;  %p138_p7 = scmp.lt.s32.totalorder %s678_s17, 5 }
   0xc   : > { %s680_s25 = smov [#allocation6]   ;;  %s32_s28 = sadd.s32 1, %s674_s16 }
   0xd   : > { %s889_s23 = scalar_select %p756_p6, 1, 0 }
   0xe   : > { %p761_p8 = pnand %p432_p5, %p138_p7  ;;  %s153_s26 = sshll.u32 %s680_s25, 4  ;;  %s154_s26 = int_to_ptr.vmem [resolvable:$true] %s153_s26 }
   0xf   : > { %s551_s29 = scalar_lea.vmem %s154_s26, 512  ;;  %p559_p3 = scmp.lt.s32.totalorder %s154_s26, %s154_s26 }
  0x10   : > { %p471_p9 = pneg %p761_p8  ;;  %p552_p12 = scmp.ne.s32.totalorder %s154_s26, %s551_s29 }
  0x11   : > { %p560_p5 = scmp.lt.s32.totalorder %s551_s29, %s551_s29 }
  0x12   : > { %p769_p10 = pnand %p471_p9, %p741_p1 }
  0x13   : > { %p561_p7 = por %p560_p5, %p559_p3 }
  0x14   : > { %p542_p11 = pneg %p769_p10 }
  0x16   : > { %p554_p13 = pnand %p552_p12, %p542_p11 }
  0x18   : > { %p555_p0 = pneg %p554_p13 }
  0x1a   : > { %p562_p6 = pnand %p561_p7, %p555_p0 }
  0x1c   : > { %565 = shalt.err (!%p562_p6)
}
  0x1d   : > { %s681_s30 = smov 128   ;;  %s682_s4 = smov 8  }
  0x1e   : > { %474 = dma.hbm_to_vmem [thread:$0]  (!%p769_p10), %s882_s1, 512, %s154_s26, [#allocation7], %s681_s30, %s681_s30, %s682_s4  }
  0x1f   : > { %p34_p9 = scmp.ge.s32.totalorder %s32_s28, 4  ;;  %s41_s7 = sadd.s32 1, %s666_s14 }
  0x20   : > { %p48_p6 = scmp.ne.s32.totalorder %s666_s14, %s662_s13  ;;  %p49_p11 = scmp.eq.s32.totalorder %s678_s17, 0 }
  0x21   : > { %s903_s28 = smov (%p34_p9, %s32_s28), 0  ;;  %p484_p0 = scmp.lt.s32.totalorder %s678_s17, 4 }
  0x22   : > { %p787_p12 = por %p49_p11, %p48_p6  ;;  %p793_p13 = por %p745_p2, %p48_p6 }
  0x23   : > { %s36_s10 = ssub.s32 %s674_s16, %s903_s28  ;;  %s170_s11 = sand.u32 1, %s666_s14  }
  0x24   : > { %s893_s9 = scalar_select %p793_p13, 1, 0 }
  0x25   : > { %p39_p10 = scmp.eq.s32.totalorder %s36_s10, 0  ;;  %s435_s18 = sshll.u32 %s170_s11, 3 }
  0x26   : > { %s436_s25 = sshll.u32 %s674_s16, 7  ;;  %s174_s30 = scalar_lea.vmem [#allocation3], %s435_s18 }
  0x27   : > { %s802_s19 = scalar_select %p39_p10, %s666_s14, %s41_s7  }
  0x28   : > { %s180_s29 = scalar_lea.hbm %s881_s0, %s436_s25  ;;  %s182_s4 = sshll.u32 %s174_s30, 4  ;;  %s183_s4 = int_to_ptr.vmem [resolvable:$true] %s182_s4 }
  0x29   : > { %p810_p2 = pnand %p484_p0, %p787_p12  ;;  %s171_s5 = scalar_lea.sflag [#allocation4], %s170_s11 }
  0x2a   : > { %s579_s6 = scalar_lea.vmem %s183_s4, 128  ;;  %s683_s7 = smov [#allocation3]  }
  0x2b   : > { %p568_p3 = pneg %p810_p2  ;;  %p580_p5 = scmp.ne.s32.totalorder %s183_s4, %s579_s6 }
  0x2c   : > { %s584_s10 = sshll.u32 %s683_s7, 4  ;;  %s585_s10 = int_to_ptr.vmem [resolvable:$false] %s584_s10 }
  0x2d   : > { %p582_p7 = pnand %p580_p5, %p568_p3  ;;  %s586_s25 = scalar_lea.vmem %s585_s10, 256 }
  0x2e   : > { %p587_p6 = scmp.lt.s32.totalorder %s183_s4, %s585_s10  ;;  %p588_p11 = scmp.lt.s32.totalorder %s586_s25, %s579_s6 }
  0x2f   : > { %p583_p9 = pneg %p582_p7 }
  0x30   : > { %p589_p10 = por %p588_p11, %p587_p6 }
  0x32   : > { %p590_p13 = pnand %p589_p10, %p583_p9 }
  0x34   : > { %593 = shalt.err (!%p590_p13)
}
  0x35   : > { %478 = dma.hbm_to_vmem [thread:$0]  (!%p810_p2), %s180_s29, 128, %s183_s4, %s171_s5  }
  0x36   : > { %191 = sbr.rel (%p761_p8) target bundleno = 279 (0x117), region = 32  ;;  %s821_s8 = sand.u32 (!%p761_p8), 1, %s662_s13  }
  0x37   : > { %s438_s11 = sshll.u32 (!%p761_p8), %s821_s8, 3  ;;  %s194_s18 = scalar_lea.sflag (!%p761_p8), [#allocation4], %s821_s8 }
  0x38   : > { %s197_s26 = scalar_lea.vmem (!%p761_p8), [#allocation3], %s438_s11 }
  0x3b   : > { %645 = dma.done.wait (%p751_p4), %s194_s18, 128  }
  0x3c   : > { %647 = vsyncadd (%p751_p4), %s194_s18, 4294967168 }
  0x3d   : > { %649 = dma.done.wait (%p741_p1), [#allocation7], 512  }
  0x3e   : > { %651 = vsyncadd (%p741_p1), [#allocation7], 4294966784  ;;  %v684_v0 = vmov 0.0   ;;  %vm685_vm0 = vmmov 0   ;;  %v235_v1 = vld [vmem:[#allocation6 + $0x18] sm:$0xff]  ;;  %v234_v2 = vld [vmem:[#allocation6 + $0x10] sm:$0xff] }
  0x3f   : > { %452 = vmatprep.subr.mxu0 %v684_v0  ;;  %460 = vmatprep.mubr.msk.f32.mxu0 %vm685_vm0, %v684_v0  ;;  %v233_v3 = vld [vmem:[#allocation6 + $0x8] sm:$0xff]  ;;  %v232_v4 = vld [vmem:[#allocation6] sm:$0xff]  ;;  %v230_v5 = vld [vmem:[%s197_s26] sm:$0xff]  ;;  %vm236_vm1 = vcmask 261120   ;;  %s444_s24 = sshll.u32 %s670_s15, 7  ;;  %s223_s27 = scalar_lea.vmem [#allocation8], %s438_s11 }
  0x40   : > { %453 = vmatpush3.msra.mxu0 %v235_v1  ;;  %v442_v6 = vld [vmem:[%s883_s2] ss:$0 sm:$0xff]  ;;  %s339_s29 = sshll.u32 %s223_s27, 4  ;;  %s840_s21 = scalar_lea.hbm %s884_s3, %s444_s24  ;;  %s340_s29 = int_to_ptr.vmem [resolvable:$true] %s339_s29 }
  0x41   : > { %454 = vmatprep.subr.mxu0 %v684_v0  ;;  %s326_s5 = scalar_lea.sflag [#allocation5], %s821_s8  ;;  %s594_s6 = scalar_lea.vmem %s340_s29, 128 }
  0x42   : > { %455 = vmatpush3.msra.mxu0 %v234_v2  ;;  %p595_p1 = scmp.ne.s32.totalorder %s340_s29, %s594_s6  ;;  %p895_p4 = scmp.ne.s32.totalorder %s893_s9, 0 }
  0x43   : > { %456 = vmatprep.subr.mxu0 %v684_v0  ;;  %s686_s7 = smov [#allocation8]  }
  0x44   : > { %457 = vmatpush3.msra.mxu0 %v233_v3  ;;  %p596_p8 = pnand %p595_p1, %p895_p4  ;;  %s598_s15 = sshll.u32 %s686_s7, 4  ;;  %s599_s15 = int_to_ptr.vmem [resolvable:$false] %s598_s15 }
  0x45   : > { %458 = vmatprep.subr.mxu0 %v684_v0  ;;  %s600_s10 = scalar_lea.vmem %s599_s15, 256  ;;  %p601_p13 = scmp.lt.s32.totalorder %s340_s29, %s599_s15 }
  0x46   : > { %459 = vmatpush3.msra.mxu0 %v232_v4  ;;  %p597_p12 = pneg %p596_p8  ;;  %p602_p0 = scmp.lt.s32.totalorder %s600_s10, %s594_s6 }
  0x47   : > { %461 = vmatmul.mubr.msk.f32.vlgmr.msra.gmra.mxu0 %vm236_vm1, %v230_v5 }
  0x48   : > { %p603_p2 = por %p602_p0, %p601_p13 }
  0x4a   : > { %p604_p3 = pnand %p603_p2, %p597_p12 }
 0x107   : > { %v306_v7 = vpop.f32.mrf.mxu0 }
 0x108   : > { %v323_v8 = vadd.f32 %v442_v6, %v306_v7 }
 0x109   : > { %v462_v9 = vpop.f32.mrf.mxu0 }
 0x10a   : > { %324 = vst [vmem:[%s223_s27] sm:$0xff] %v323_v8 }
 0x10b   : > { %607 = shalt.err (!%p604_p3)
}
 0x10c   : > { %s608_s25 = scalar_lea.hbm %s840_s21, 128  ;;  %s612_s18 = scalar_lea.hbm %s884_s3, 512 }
 0x10d   : > { %p609_p5 = scmp.ne.s32.totalorder %s840_s21, %s608_s25  ;;  %p613_p6 = scmp.lt.s32.totalorder %s840_s21, %s884_s3 }
 0x10e   : > { %p614_p11 = scmp.lt.s32.totalorder %s612_s18, %s608_s25 }
 0x10f   : > { %p610_p7 = pnand %p609_p5, %p895_p4 }
 0x110   : > { %p615_p10 = por %p614_p11, %p613_p6 }
 0x111   : > { %p611_p9 = pneg %p610_p7 }
 0x113   : > { %p616_p1 = pnand %p615_p10, %p611_p9 }
 0x115   : > { %619 = shalt.err (!%p616_p1)
}
 0x116   : > { %469 = dma.vmem_to_hbm [thread:$0]  (%p895_p4), %s340_s29, 128, %s840_s21, %s326_s5  }
 0x117 PF: > { %p486_p8 = scmp.ge.s32.totalorder %s678_s17, 2  ;;  %s351_s22 = sand.u32 1, %s658_s12  }
 0x118   : > { %p896_p12 = scmp.ne.s32.totalorder %s889_s23, 0  ;;  %s352_s24 = scalar_lea.sflag [#allocation5], %s351_s22 }
 0x11a   : > { %p480_p13 = pnand %p486_p8, %p896_p12 }
 0x11c   : > { %p481_p0 = pneg %p480_p13 }
 0x11e   : > { %653 = dma.done.wait (%p481_p0), %s352_s24, 128  }
 0x11f   : > { %655 = vsyncadd (%p481_p0), %s352_s24, 4294967168  ;;  %s20_s17 = sadd.s32 1, %s678_s17   ;;  %s897_s12 = smov %s662_s13 }
 0x120   : > { %p17_p2 = scmp.ge.s32.totalorder %s20_s17, 6   ;;  %s898_s13 = smov %s666_s14 }
 0x121   : > { %s899_s14 = smov %s802_s19  ;;  %s900_s15 = smov %s674_s16 }
 0x122   : > { %s901_s16 = smov %s903_s28  ;;  %19 = sbr.rel (!%p17_p2) target bundleno = 7 (0x7), region = 90 }
 0x127   :  { %357 = vsyncpa [#allocation4], 1 }
 0x128   :  { %359 = vsyncpa [#allocation4 + $0x1], 1 }
 0x129   :  { %360 = vsyncpa [#allocation7], 1 }
 0x12a   :  { %361 = vsyncpa [#allocation5], 1 }
 0x12b   :  { %363 = vsyncpa [#allocation5 + $0x1], 1 }

</bundles_post_ra>
